<compile_context>
chip_gen: v7x
topology: tpu7x:2x2x1
jax: 0.10.0
libtpu: 0.0.40
codegen_flags: <defaults>
</compile_context>

<pallas_src>
import math
import jax
import jax.numpy as jnp
from jax.experimental import pallas as pl
from jax.experimental.pallas import tpu as pltpu

# ---------------- config (small, consistent with the module) ----------------
B = 2            # batch
S = 8            # sequence length (query == key == value length here)
HID = 32         # hid_dim
NH = 4           # n_heads
HD = HID // NH   # head_dim
DROPOUT = 0.0    # identity at inference
SCALE = math.sqrt(float(HD))


# ------------------------------- Pallas kernel -------------------------------
def mha_kernel(xq_ref, xk_ref, xv_ref, w_ref, b_ref, out_ref, attn_ref):
    # Per grid step (one batch element b):
    #   xq/xk/xv_ref : (1, S, HID) f32 activations
    #   w_ref        : (4, HID, HID) bf16 = [Wq^T/scale, Wk^T, Wv^T, Wo^T]
    #   b_ref        : (4, HID)      f32  = [bq/scale,  bk,   bv,   bo  ]
    #   out_ref      : (1, S, HID)   f32
    #   attn_ref     : (1, NH, S, S) f32
    f32, bf16 = jnp.float32, jnp.bfloat16

    xq = xq_ref[0].astype(bf16)          # (S, HID)
    xk = xk_ref[0].astype(bf16)
    xv = xv_ref[0].astype(bf16)

    # Fused full-width projections: one MXU matmul each, f32 accumulation.
    # 1/sqrt(head_dim) is already folded into w_ref[0] / b_ref[0].
    q = jnp.dot(xq, w_ref[0], preferred_element_type=f32) + b_ref[0:1, :]   # (S, HID)
    k = jnp.dot(xk, w_ref[1], preferred_element_type=f32) + b_ref[1:2, :]
    v = jnp.dot(xv, w_ref[2], preferred_element_type=f32) + b_ref[2:3, :]

    # Split heads with static lane slices -> (NH, S, HD); bf16 for the MXU.
    q3 = jnp.stack([q[:, h * HD:(h + 1) * HD] for h in range(NH)], axis=0).astype(bf16)
    k3 = jnp.stack([k[:, h * HD:(h + 1) * HD] for h in range(NH)], axis=0).astype(bf16)
    v3 = jnp.stack([v[:, h * HD:(h + 1) * HD] for h in range(NH)], axis=0).astype(bf16)

    # energy[h, q, k] = (Q . K) / sqrt(head_dim)  (scale folded into Q).
    energy = jnp.einsum('hqd,hkd->hqk', q3, k3, preferred_element_type=f32)  # (NH,S,S)
    # TODO(synk): optional `mask` argument (masked_fill with -1e10) not wired in;
    # this kernel implements the mask=None path only.

    # Softmax in f32; exact reciprocal so the returned attention rows sum to 1.
    m = jnp.max(energy, axis=-1, keepdims=True)
    p = jnp.exp(energy - m)
    attn = p / jnp.sum(p, axis=-1, keepdims=True)                           # (NH,S,S)
    attn_ref[0] = attn

    # dropout(p=DROPOUT) is identity in eval mode.
    ctx3 = jnp.einsum('hqk,hkd->hqd', attn.astype(bf16), v3,
                      preferred_element_type=f32)                           # (NH,S,HD)

    # Concat heads along lanes -> (S, NH*HD) == concat(heads); single output
    # projection matmul replaces the per-head matmuls + head-sum.
    ctx = jnp.concatenate([ctx3[h] for h in range(NH)], axis=1)             # (S, HID)
    out = jnp.dot(ctx.astype(bf16), w_ref[3], preferred_element_type=f32) + b_ref[3:4, :]
    out_ref[0] = out.astype(out_ref.dtype)


# --------------------------- one-time parameter prep --------------------------
def prepare_params(params):
    """Pack all weights into one (4, HID, HID) bf16 operand (transposed to
    (in, out), 1/sqrt(head_dim) folded into Wq) and all biases into one
    (4, HID) f32 operand.  Runs ONCE, outside the per-call wrapper."""
    inv_scale = 1.0 / SCALE
    w = jnp.stack([params["wq"].T * inv_scale,
                   params["wk"].T,
                   params["wv"].T,
                   params["wo"].T], axis=0).astype(jnp.bfloat16)   # (4, HID, HID)
    b = jnp.stack([params["bq"] * inv_scale,
                   params["bk"],
                   params["bv"],
                   params["bo"]], axis=0).astype(jnp.float32)      # (4, HID)
    return dict(w=w, b=b)


# ------------------------------ Python wrapper -------------------------------
@jax.jit
def multi_head_attention(query, key, value, prep):
    out, attn = pl.pallas_call(
        mha_kernel,
        grid=(B,),
        out_shape=(
            jax.ShapeDtypeStruct((B, S, HID), jnp.float32),
            jax.ShapeDtypeStruct((B, NH, S, S), jnp.float32),
        ),
        in_specs=[
            pl.BlockSpec((1, S, HID), lambda b: (b, 0, 0)),      # query
            pl.BlockSpec((1, S, HID), lambda b: (b, 0, 0)),      # key
            pl.BlockSpec((1, S, HID), lambda b: (b, 0, 0)),      # value
            pl.BlockSpec((4, HID, HID), lambda b: (0, 0, 0)),    # packed weights (staged once)
            pl.BlockSpec((4, HID), lambda b: (0, 0)),            # packed biases  (staged once)
        ],
        out_specs=(
            pl.BlockSpec((1, S, HID), lambda b: (b, 0, 0)),
            pl.BlockSpec((1, NH, S, S), lambda b: (b, 0, 0, 0)),
        ),
        compiler_params=pltpu.CompilerParams(
            dimension_semantics=("parallel",)),                  # v7x: 2nd TC not idle
    )(query, key, value, prep["w"], prep["b"])
    return out, attn


# --------------------------- reference (pure JAX) -----------------------------
def mha_reference(query, key, value, params):
    def lin(x, w, b):
        return x @ w.T + b
    Q = lin(query, params["wq"], params["bq"])
    K = lin(key, params["wk"], params["bk"])
    V = lin(value, params["wv"], params["bv"])
    Q = Q.reshape(B, S, NH, HD).transpose(0, 2, 1, 3)
    K = K.reshape(B, S, NH, HD).transpose(0, 2, 1, 3)
    V = V.reshape(B, S, NH, HD).transpose(0, 2, 1, 3)
    energy = jnp.einsum("bhqd,bhkd->bhqk", Q, K) / SCALE
    attn = jax.nn.softmax(energy, axis=-1)
    x = jnp.einsum("bhqk,bhkd->bhqd", attn, V)
    x = x.transpose(0, 2, 1, 3).reshape(B, S, HID)
    x = lin(x, params["wo"], params["bo"])
    return x, attn


# ------------------------------------ main ------------------------------------
if __name__ == "__main__":
    key0 = jax.random.PRNGKey(0)
    keys = jax.random.split(key0, 12)

    # Deterministic parameter init (nn.Linear-style uniform(-1/sqrt(in), 1/sqrt(in)))
    bound = 1.0 / math.sqrt(HID)

    def u(k, shape):
        return jax.random.uniform(k, shape, jnp.float32, -bound, bound)

    params = {
        "wq": u(keys[0], (HID, HID)), "bq": u(keys[1], (HID,)),
        "wk": u(keys[2], (HID, HID)), "bk": u(keys[3], (HID,)),
        "wv": u(keys[4], (HID, HID)), "bv": u(keys[5], (HID,)),
        "wo": u(keys[6], (HID, HID)), "bo": u(keys[7], (HID,)),
    }

    query = jax.random.normal(keys[8], (B, S, HID), jnp.float32)
    key_in = jax.random.normal(keys[9], (B, S, HID), jnp.float32)
    value = jax.random.normal(keys[10], (B, S, HID), jnp.float32)

    prep = prepare_params(params)          # one-time weight packing (not per call)

    out, attn = multi_head_attention(query, key_in, value, prep)
    out = jax.block_until_ready(out)
    attn = jax.block_until_ready(attn)

    ref_out, ref_attn = mha_reference(query, key_in, value, params)
    assert out.shape == (B, S, HID)
    assert attn.shape == (B, NH, S, S)
    # bf16 MXU operands (f32 accumulation / f32 softmax) => loosened tolerance
    assert jnp.allclose(out, ref_out, atol=3e-2, rtol=3e-2)
    assert jnp.allclose(attn, ref_attn, atol=1e-2, rtol=1e-2)

    print("KERNEL_OK")
</pallas_src>

<mosaic_0001>
module attributes {stable_mosaic.version = 11 : i64} {
  func.func @mha_kernel(%arg0: i32, %arg1: memref<1x8x32xf32, #tpu.memory_space<vmem>>, %arg2: memref<1x8x32xf32, #tpu.memory_space<vmem>>, %arg3: memref<1x8x32xf32, #tpu.memory_space<vmem>>, %arg4: memref<4x32x32xbf16, #tpu.memory_space<vmem>>, %arg5: memref<4x32xf32, #tpu.memory_space<vmem>>, %arg6: memref<1x8x32xf32, #tpu.memory_space<vmem>>, %arg7: memref<1x4x8x8xf32, #tpu.memory_space<vmem>>) attributes {dimension_semantics = [#tpu.dimension_semantics<parallel>], iteration_bounds = array<i64: 2>, scalar_prefetch = 0 : i64, scratch_operands = 0 : i64, tpu.core_type = #tpu.core_type<tc>, window_params = [{transform_indices = @transform_0, window_bounds = array<i64: 1, 8, 32>}, {transform_indices = @transform_1, window_bounds = array<i64: 1, 8, 32>}, {transform_indices = @transform_2, window_bounds = array<i64: 1, 8, 32>}, {pipeline_mode = #tpu.pipeline_mode<synchronous>, transform_indices = @transform_3, window_bounds = array<i64: 4, 32, 32>}, {pipeline_mode = #tpu.pipeline_mode<synchronous>, transform_indices = @transform_4, window_bounds = array<i64: 4, 32>}, {transform_indices = @transform_5, window_bounds = array<i64: 1, 8, 32>}, {transform_indices = @transform_6, window_bounds = array<i64: 1, 4, 8, 8>}]} {
    %c0 = arith.constant 0 : index
    %c0_0 = arith.constant 0 : index
    %c0_1 = arith.constant 0 : index
    %0 = vector.load %arg1[%c0, %c0_0, %c0_1] : memref<1x8x32xf32, #tpu.memory_space<vmem>>, vector<1x8x32xf32>
    %1 = vector.shape_cast %0 : vector<1x8x32xf32> to vector<8x32xf32>
    %2 = arith.truncf %1 : vector<8x32xf32> to vector<8x32xbf16>
    %c0_2 = arith.constant 0 : index
    %c0_3 = arith.constant 0 : index
    %c0_4 = arith.constant 0 : index
    %3 = vector.load %arg2[%c0_2, %c0_3, %c0_4] : memref<1x8x32xf32, #tpu.memory_space<vmem>>, vector<1x8x32xf32>
    %4 = vector.shape_cast %3 : vector<1x8x32xf32> to vector<8x32xf32>
    %5 = arith.truncf %4 : vector<8x32xf32> to vector<8x32xbf16>
    %c0_5 = arith.constant 0 : index
    %c0_6 = arith.constant 0 : index
    %c0_7 = arith.constant 0 : index
    %6 = vector.load %arg3[%c0_5, %c0_6, %c0_7] : memref<1x8x32xf32, #tpu.memory_space<vmem>>, vector<1x8x32xf32>
    %7 = vector.shape_cast %6 : vector<1x8x32xf32> to vector<8x32xf32>
    %8 = arith.truncf %7 : vector<8x32xf32> to vector<8x32xbf16>
    %c0_8 = arith.constant 0 : index
    %c0_9 = arith.constant 0 : index
    %c0_10 = arith.constant 0 : index
    %9 = vector.load %arg4[%c0_8, %c0_9, %c0_10] : memref<4x32x32xbf16, #tpu.memory_space<vmem>>, vector<1x32x32xbf16>
    %10 = vector.shape_cast %9 : vector<1x32x32xbf16> to vector<32x32xbf16>
    %cst = arith.constant dense<0.000000e+00> : vector<8x32xf32>
    %11 = tpu.matmul %2, %10, %cst {dimension_numbers = #tpu.dot_dimension_numbers<[1], [0], [0], [1], [0, 0, 1, 1], [], []>} : vector<8x32xbf16>, vector<32x32xbf16>, vector<8x32xf32> -> vector<8x32xf32>
    %c0_11 = arith.constant 0 : index
    %c0_12 = arith.constant 0 : index
    %12 = vector.load %arg5[%c0_11, %c0_12] : memref<4x32xf32, #tpu.memory_space<vmem>>, vector<1x32xf32>
    %13 = vector.broadcast %12 : vector<1x32xf32> to vector<8x32xf32>
    %14 = arith.addf %11, %13 : vector<8x32xf32>
    %c1 = arith.constant 1 : index
    %c0_13 = arith.constant 0 : index
    %c0_14 = arith.constant 0 : index
    %15 = vector.load %arg4[%c1, %c0_13, %c0_14] : memref<4x32x32xbf16, #tpu.memory_space<vmem>>, vector<1x32x32xbf16>
    %16 = vector.shape_cast %15 : vector<1x32x32xbf16> to vector<32x32xbf16>
    %cst_15 = arith.constant dense<0.000000e+00> : vector<8x32xf32>
    %17 = tpu.matmul %5, %16, %cst_15 {dimension_numbers = #tpu.dot_dimension_numbers<[1], [0], [0], [1], [0, 0, 1, 1], [], []>} : vector<8x32xbf16>, vector<32x32xbf16>, vector<8x32xf32> -> vector<8x32xf32>
    %c1_16 = arith.constant 1 : index
    %c0_17 = arith.constant 0 : index
    %18 = vector.load %arg5[%c1_16, %c0_17] : memref<4x32xf32, #tpu.memory_space<vmem>>, vector<1x32xf32>
    %19 = vector.broadcast %18 : vector<1x32xf32> to vector<8x32xf32>
    %20 = arith.addf %17, %19 : vector<8x32xf32>
    %c2 = arith.constant 2 : index
    %c0_18 = arith.constant 0 : index
    %c0_19 = arith.constant 0 : index
    %21 = vector.load %arg4[%c2, %c0_18, %c0_19] : memref<4x32x32xbf16, #tpu.memory_space<vmem>>, vector<1x32x32xbf16>
    %22 = vector.shape_cast %21 : vector<1x32x32xbf16> to vector<32x32xbf16>
    %cst_20 = arith.constant dense<0.000000e+00> : vector<8x32xf32>
    %23 = tpu.matmul %8, %22, %cst_20 {dimension_numbers = #tpu.dot_dimension_numbers<[1], [0], [0], [1], [0, 0, 1, 1], [], []>} : vector<8x32xbf16>, vector<32x32xbf16>, vector<8x32xf32> -> vector<8x32xf32>
    %c2_21 = arith.constant 2 : index
    %c0_22 = arith.constant 0 : index
    %24 = vector.load %arg5[%c2_21, %c0_22] : memref<4x32xf32, #tpu.memory_space<vmem>>, vector<1x32xf32>
    %25 = vector.broadcast %24 : vector<1x32xf32> to vector<8x32xf32>
    %26 = arith.addf %23, %25 : vector<8x32xf32>
    %27 = vector.extract_strided_slice %14 {offsets = [0, 0], sizes = [8, 8], strides = [1, 1]} : vector<8x32xf32> to vector<8x8xf32>
    %28 = vector.extract_strided_slice %14 {offsets = [0, 8], sizes = [8, 8], strides = [1, 1]} : vector<8x32xf32> to vector<8x8xf32>
    %29 = vector.extract_strided_slice %14 {offsets = [0, 16], sizes = [8, 8], strides = [1, 1]} : vector<8x32xf32> to vector<8x8xf32>
    %30 = vector.extract_strided_slice %14 {offsets = [0, 24], sizes = [8, 8], strides = [1, 1]} : vector<8x32xf32> to vector<8x8xf32>
    %31 = vector.shape_cast %27 : vector<8x8xf32> to vector<1x8x8xf32>
    %32 = vector.shape_cast %28 : vector<8x8xf32> to vector<1x8x8xf32>
    %33 = vector.shape_cast %29 : vector<8x8xf32> to vector<1x8x8xf32>
    %34 = vector.shape_cast %30 : vector<8x8xf32> to vector<1x8x8xf32>
    %35 = tpu.concatenate %31, %32, %33, %34 in 0 : vector<1x8x8xf32>, vector<1x8x8xf32>, vector<1x8x8xf32>, vector<1x8x8xf32> -> vector<4x8x8xf32>
    %36 = arith.truncf %35 : vector<4x8x8xf32> to vector<4x8x8xbf16>
    %37 = vector.extract_strided_slice %20 {offsets = [0, 0], sizes = [8, 8], strides = [1, 1]} : vector<8x32xf32> to vector<8x8xf32>
    %38 = vector.extract_strided_slice %20 {offsets = [0, 8], sizes = [8, 8], strides = [1, 1]} : vector<8x32xf32> to vector<8x8xf32>
    %39 = vector.extract_strided_slice %20 {offsets = [0, 16], sizes = [8, 8], strides = [1, 1]} : vector<8x32xf32> to vector<8x8xf32>
    %40 = vector.extract_strided_slice %20 {offsets = [0, 24], sizes = [8, 8], strides = [1, 1]} : vector<8x32xf32> to vector<8x8xf32>
    %41 = vector.shape_cast %37 : vector<8x8xf32> to vector<1x8x8xf32>
    %42 = vector.shape_cast %38 : vector<8x8xf32> to vector<1x8x8xf32>
    %43 = vector.shape_cast %39 : vector<8x8xf32> to vector<1x8x8xf32>
    %44 = vector.shape_cast %40 : vector<8x8xf32> to vector<1x8x8xf32>
    %45 = tpu.concatenate %41, %42, %43, %44 in 0 : vector<1x8x8xf32>, vector<1x8x8xf32>, vector<1x8x8xf32>, vector<1x8x8xf32> -> vector<4x8x8xf32>
    %46 = arith.truncf %45 : vector<4x8x8xf32> to vector<4x8x8xbf16>
    %47 = vector.extract_strided_slice %26 {offsets = [0, 0], sizes = [8, 8], strides = [1, 1]} : vector<8x32xf32> to vector<8x8xf32>
    %48 = vector.extract_strided_slice %26 {offsets = [0, 8], sizes = [8, 8], strides = [1, 1]} : vector<8x32xf32> to vector<8x8xf32>
    %49 = vector.extract_strided_slice %26 {offsets = [0, 16], sizes = [8, 8], strides = [1, 1]} : vector<8x32xf32> to vector<8x8xf32>
    %50 = vector.extract_strided_slice %26 {offsets = [0, 24], sizes = [8, 8], strides = [1, 1]} : vector<8x32xf32> to vector<8x8xf32>
    %51 = vector.shape_cast %47 : vector<8x8xf32> to vector<1x8x8xf32>
    %52 = vector.shape_cast %48 : vector<8x8xf32> to vector<1x8x8xf32>
    %53 = vector.shape_cast %49 : vector<8x8xf32> to vector<1x8x8xf32>
    %54 = vector.shape_cast %50 : vector<8x8xf32> to vector<1x8x8xf32>
    %55 = tpu.concatenate %51, %52, %53, %54 in 0 : vector<1x8x8xf32>, vector<1x8x8xf32>, vector<1x8x8xf32>, vector<1x8x8xf32> -> vector<4x8x8xf32>
    %56 = arith.truncf %55 : vector<4x8x8xf32> to vector<4x8x8xbf16>
    "tpu.trace_start"() <{level = 10 : i32, message = "hqd,hkd->hqk"}> : () -> ()
    %cst_23 = arith.constant dense<0.000000e+00> : vector<4x8x8xf32>
    %57 = tpu.matmul %36, %46, %cst_23 {dimension_numbers = #tpu.dot_dimension_numbers<[2], [2], [1], [1], [0, 0, 0, 1, 1, 1], [0], [0]>} : vector<4x8x8xbf16>, vector<4x8x8xbf16>, vector<4x8x8xf32> -> vector<4x8x8xf32>
    "tpu.trace_stop"() : () -> ()
    %cst_24 = arith.constant dense<0xFF800000> : vector<4x8xf32>
    %58 = vector.multi_reduction <maximumf>, %57, %cst_24 [2] : vector<4x8x8xf32> to vector<4x8xf32>
    %59 = vector.shape_cast %58 : vector<4x8xf32> to vector<4x8x1xf32>
    %60 = vector.broadcast %59 : vector<4x8x1xf32> to vector<4x8x8xf32>
    %61 = arith.subf %57, %60 : vector<4x8x8xf32>
    %62 = math.exp %61 : vector<4x8x8xf32>
    %cst_25 = arith.constant dense<0.000000e+00> : vector<4x8xf32>
    %63 = vector.multi_reduction <add>, %62, %cst_25 [2] : vector<4x8x8xf32> to vector<4x8xf32>
    %64 = vector.shape_cast %63 : vector<4x8xf32> to vector<4x8x1xf32>
    %65 = vector.broadcast %64 : vector<4x8x1xf32> to vector<4x8x8xf32>
    %66 = arith.divf %62, %65 : vector<4x8x8xf32>
    %c0_26 = arith.constant 0 : index
    %c0_27 = arith.constant 0 : index
    %c0_28 = arith.constant 0 : index
    %c0_29 = arith.constant 0 : index
    %67 = vector.load %arg7[%c0_26, %c0_27, %c0_28, %c0_29] : memref<1x4x8x8xf32, #tpu.memory_space<vmem>>, vector<1x4x8x8xf32>
    %68 = vector.shape_cast %67 : vector<1x4x8x8xf32> to vector<4x8x8xf32>
    %69 = vector.shape_cast %66 : vector<4x8x8xf32> to vector<1x4x8x8xf32>
    tpu.vector_store %arg7[%c0_26, %c0_27, %c0_28, %c0_29], %69 {strides = array<i32>} : memref<1x4x8x8xf32, #tpu.memory_space<vmem>>, vector<1x4x8x8xf32>,
    %70 = arith.truncf %66 : vector<4x8x8xf32> to vector<4x8x8xbf16>
    "tpu.trace_start"() <{level = 10 : i32, message = "hqk,hkd->hqd"}> : () -> ()
    %cst_30 = arith.constant dense<0.000000e+00> : vector<4x8x8xf32>
    %71 = tpu.matmul %70, %56, %cst_30 {dimension_numbers = #tpu.dot_dimension_numbers<[2], [1], [1], [2], [0, 0, 0, 1, 1, 2], [0], [0]>} : vector<4x8x8xbf16>, vector<4x8x8xbf16>, vector<4x8x8xf32> -> vector<4x8x8xf32>
    "tpu.trace_stop"() : () -> ()
    %72 = vector.extract_strided_slice %71 {offsets = [0, 0, 0], sizes = [1, 8, 8], strides = [1, 1, 1]} : vector<4x8x8xf32> to vector<1x8x8xf32>
    %73 = vector.shape_cast %72 : vector<1x8x8xf32> to vector<8x8xf32>
    %74 = vector.extract_strided_slice %71 {offsets = [1, 0, 0], sizes = [1, 8, 8], strides = [1, 1, 1]} : vector<4x8x8xf32> to vector<1x8x8xf32>
    %75 = vector.shape_cast %74 : vector<1x8x8xf32> to vector<8x8xf32>
    %76 = vector.extract_strided_slice %71 {offsets = [2, 0, 0], sizes = [1, 8, 8], strides = [1, 1, 1]} : vector<4x8x8xf32> to vector<1x8x8xf32>
    %77 = vector.shape_cast %76 : vector<1x8x8xf32> to vector<8x8xf32>
    %78 = vector.extract_strided_slice %71 {offsets = [3, 0, 0], sizes = [1, 8, 8], strides = [1, 1, 1]} : vector<4x8x8xf32> to vector<1x8x8xf32>
    %79 = vector.shape_cast %78 : vector<1x8x8xf32> to vector<8x8xf32>
    %80 = tpu.concatenate %73, %75, %77, %79 in 1 : vector<8x8xf32>, vector<8x8xf32>, vector<8x8xf32>, vector<8x8xf32> -> vector<8x32xf32>
    %81 = arith.truncf %80 : vector<8x32xf32> to vector<8x32xbf16>
    %c3 = arith.constant 3 : index
    %c0_31 = arith.constant 0 : index
    %c0_32 = arith.constant 0 : index
    %82 = vector.load %arg4[%c3, %c0_31, %c0_32] : memref<4x32x32xbf16, #tpu.memory_space<vmem>>, vector<1x32x32xbf16>
    %83 = vector.shape_cast %82 : vector<1x32x32xbf16> to vector<32x32xbf16>
    %cst_33 = arith.constant dense<0.000000e+00> : vector<8x32xf32>
    %84 = tpu.matmul %81, %83, %cst_33 {dimension_numbers = #tpu.dot_dimension_numbers<[1], [0], [0], [1], [0, 0, 1, 1], [], []>} : vector<8x32xbf16>, vector<32x32xbf16>, vector<8x32xf32> -> vector<8x32xf32>
    %c3_34 = arith.constant 3 : index
    %c0_35 = arith.constant 0 : index
    %85 = vector.load %arg5[%c3_34, %c0_35] : memref<4x32xf32, #tpu.memory_space<vmem>>, vector<1x32xf32>
    %86 = vector.broadcast %85 : vector<1x32xf32> to vector<8x32xf32>
    %87 = arith.addf %84, %86 : vector<8x32xf32>
    %c0_36 = arith.constant 0 : index
    %c0_37 = arith.constant 0 : index
    %c0_38 = arith.constant 0 : index
    %88 = vector.load %arg6[%c0_36, %c0_37, %c0_38] : memref<1x8x32xf32, #tpu.memory_space<vmem>>, vector<1x8x32xf32>
    %89 = vector.shape_cast %88 : vector<1x8x32xf32> to vector<8x32xf32>
    %90 = vector.shape_cast %87 : vector<8x32xf32> to vector<1x8x32xf32>
    tpu.vector_store %arg6[%c0_36, %c0_37, %c0_38], %90 {strides = array<i32>} : memref<1x8x32xf32, #tpu.memory_space<vmem>>, vector<1x8x32xf32>,
    return
  }
  func.func @transform_0(%arg0: i32) -> (i32, i32, i32) {
    %c0_i32 = arith.constant 0 : i32
    %c0_i32_0 = arith.constant 0 : i32
    %c0_i32_1 = arith.constant 0 : i32
    return %arg0, %c0_i32, %c0_i32_0 : i32, i32, i32
  }
  func.func @transform_1(%arg0: i32) -> (i32, i32, i32) {
    %c0_i32 = arith.constant 0 : i32
    %c0_i32_0 = arith.constant 0 : i32
    %c0_i32_1 = arith.constant 0 : i32
    return %arg0, %c0_i32, %c0_i32_0 : i32, i32, i32
  }
  func.func @transform_2(%arg0: i32) -> (i32, i32, i32) {
    %c0_i32 = arith.constant 0 : i32
    %c0_i32_0 = arith.constant 0 : i32
    %c0_i32_1 = arith.constant 0 : i32
    return %arg0, %c0_i32, %c0_i32_0 : i32, i32, i32
  }
  func.func @transform_3(%arg0: i32) -> (i32, i32, i32) {
    %c0_i32 = arith.constant 0 : i32
    %c0_i32_0 = arith.constant 0 : i32
    %c0_i32_1 = arith.constant 0 : i32
    %c0_i32_2 = arith.constant 0 : i32
    return %c0_i32, %c0_i32_0, %c0_i32_1 : i32, i32, i32
  }
  func.func @transform_4(%arg0: i32) -> (i32, i32) {
    %c0_i32 = arith.constant 0 : i32
    %c0_i32_0 = arith.constant 0 : i32
    %c0_i32_1 = arith.constant 0 : i32
    return %c0_i32, %c0_i32_0 : i32, i32
  }
  func.func @transform_5(%arg0: i32) -> (i32, i32, i32) {
    %c0_i32 = arith.constant 0 : i32
    %c0_i32_0 = arith.constant 0 : i32
    %c0_i32_1 = arith.constant 0 : i32
    return %arg0, %c0_i32, %c0_i32_0 : i32, i32, i32
  }
  func.func @transform_6(%arg0: i32) -> (i32, i32, i32, i32) {
    %c0_i32 = arith.constant 0 : i32
    %c0_i32_0 = arith.constant 0 : i32
    %c0_i32_1 = arith.constant 0 : i32
    %c0_i32_2 = arith.constant 0 : i32
    return %arg0, %c0_i32, %c0_i32_0, %c0_i32_1 : i32, i32, i32, i32
  }
}

</mosaic_0001>

<bundles_post_ra>
// kernel: multi_head_attention.1
= control target key start
LH: loop header
LB: loop body
LE: loop exit
PB: predicated region body
PF: predicated region fallthrough
CT: control target
= control target key end

     0   :  { %s2274_s0 = inlined_call_operand.hbm [shape: f32[2,8,32], index: 0, kind: input, shape index: {}]   ;;  %s2275_s1 = inlined_call_operand.hbm [shape: f32[2,8,32], index: 1, kind: input, shape index: {}]   ;;  %s2276_s2 = inlined_call_operand.hbm [shape: f32[2,8,32], index: 2, kind: input, shape index: {}]   ;;  %s2277_s3 = inlined_call_operand.hbm [shape: bf16[4,32,32], index: 3, kind: input, shape index: {}]   ;;  %s2278_s4 = inlined_call_operand.vmem [shape: f32[4,32], index: 4, kind: input, shape index: {}]   ;;  %s2279_s5 = inlined_call_operand.hbm [shape: f32[2,8,32], index: 5, kind: output, shape index: {0}]   ;;  %s2280_s6 = inlined_call_operand.hbm [shape: f32[2,4,8,8], index: 6, kind: output, shape index: {1}]  }
   0x1   :  { %2298 = sst [smem:[#allocation23_spill]] %s2275_s1 }
   0x2   :  { %2299 = sst [smem:[#allocation24_spill]] %s2279_s5 }
   0x3   :  { %2300 = sst [smem:[#allocation25_spill]] %s2280_s6 }
   0x4   :  { %12 = vsyncpa [#allocation3], 0 }
   0x5   :  { %14 = vsyncpa [#allocation3 + $0x1], 0 }
   0x6   :  { %15 = vsyncpa [#allocation6], 0 }
   0x7   :  { %17 = vsyncpa [#allocation6 + $0x1], 0 }
   0x8   :  { %18 = vsyncpa [#allocation9], 0 }
   0x9   :  { %19 = vsyncpa [#allocation4], 0 }
   0xa   :  { %21 = vsyncpa [#allocation4 + $0x1], 0 }
   0xb   :  { %22 = vsyncpa [#allocation12], 0 }
   0xc   :  { %24 = vsyncpa [#allocation12 + $0x1], 0  ;;  %s1846_s21 = smov 0   ;;  %s1848_s22 = smov 0  }
   0xd   :  { %s1850_s23 = smov 0   ;;  %s1852_s24 = smov 0  }
   0xe LB: > { %2301 = sst [smem:[#allocation18_spill]] %s1780_s21  ;;  %s1867_s25 = sadd.s32 1, %s1792_s24   ;;  %s1792_s24 = sphi %s1852_s24, %s2331_s24   ;;  %s1788_s23 = sphi %s1850_s23, %s2335_s23   ;;  %s1784_s22 = sphi %s1848_s22, %s2334_s22   ;;  %s1780_s21 = sphi %s1846_s21, %s2333_s21  }
   0xf   : > { %2302 = sst [smem:[#allocation19_spill]] %s1792_s24  ;;  %s37_s26 = sadd.s32 1, %s1788_s23 }
  0x10   : > { %2303 = sst [smem:[#allocation20_spill]] %s1867_s25  ;;  %s34_s27 = ssub.s32 %s1792_s24, %s1867_s25 }
  0x11   : > { %p2281_p0 = scmp.ne.s32.totalorder %s1788_s23, %s1784_s22  ;;  %p35_p1 = scmp.eq.s32.totalorder %s34_s27, 0 }
  0x12   : > { %p45_p2 = scmp.eq.s32.totalorder %s1792_s24, 0  ;;  %p1497_p4 = scmp.lt.s32.totalorder %s1792_s24, 2 }
  0x13   : > { %s1878_s28 = scalar_select %p35_p1, %s1788_s23, %s37_s26  }
  0x14   : > { %p46_p5 = por %p45_p2, %p2281_p0  ;;  %s2282_s29 = sand.u32 1, %s1788_s23  }
  0x15   : > { %2304 = sst [smem:[#allocation21_spill]] %s1878_s28  ;;  %s1886_s30 = sshll.u32 %s2282_s29, 3 }
  0x16   : > { %s1889_s7 = sshll.u32 %s1792_s24, 7  ;;  %p1891_p6 = pnand %p1497_p4, %p46_p5 }
  0x17   : > { %s254_s9 = sand.u32 1, %s1792_s24   ;;  %s2306_s1 = sld [smem:[#allocation23_spill]] }
  0x18   : > { %s2305_s8 = scalar_select %p1891_p6, 1, 0 }
  0x19   : > { %s258_s13 = scalar_lea.vmem [#allocation5], %s1886_s30  ;;  %s1905_s15 = scalar_lea.sflag [#allocation6], %s254_s9 }
  0x1a   : > { %s265_s14 = sshll.u32 %s258_s13, 4  ;;  %p1911_p8 = pneg %p1891_p6  ;;  %s1903_s14 = int_to_ptr.vmem [resolvable:$true] %s265_s14 }
  0x1c   : > { %s2307_s17 = scalar_select %p1911_p8, 1, 0 }
  0x1d   : > { %s1900_s12 = scalar_lea.hbm %s2306_s1, %s1889_s7  ;;  %s1573_s20 = scalar_lea.hbm %s2306_s1, 256 }
  0x1e   : > { %s1568_s16 = scalar_lea.hbm %s1900_s12, 128  ;;  %p1574_p11 = scmp.lt.u32.totalorder %s1900_s12, %s2306_s1 }
  0x1f   : > { %p1569_p7 = scmp.ne.s32.totalorder %s1900_s12, %s1568_s16  ;;  %p1575_p12 = scmp.lt.u32.totalorder %s1573_s20, %s1568_s16 }
  0x20   : > { %p1577_p1 = scmp.lt.u32.totalorder %s1568_s16, %s1900_s12 }
  0x21   : > { %p1571_p9 = pnand %p1911_p8, %p1569_p7  ;;  %p1576_p13 = por %p1575_p12, %p1574_p11 }
  0x23   : > { %p1572_p10 = pneg %p1571_p9  ;;  %p1578_p2 = por %p1577_p1, %p1576_p13 }
  0x25   : > { %p1579_p4 = pnand %p1578_p2, %p1572_p10 }
  0x27   : > { %1582 = shalt.err (!%p1579_p4)
}
  0x28   : > { %s1583_s9 = scalar_lea.vmem %s1903_s14, 128  ;;  %s1794_s10 = smov [#allocation5]  }
  0x29   : > { %p1584_p5 = scmp.ne.s32.totalorder %s1903_s14, %s1583_s9  ;;  %s1588_s11 = sshll.u32 %s1794_s10, 4  ;;  %s1589_s11 = int_to_ptr.vmem [resolvable:$false] %s1588_s11 }
  0x2a   : > { %s1590_s13 = scalar_lea.vmem %s1589_s11, 256  ;;  %p1591_p3 = scmp.lt.s32.totalorder %s1903_s14, %s1589_s11 }
  0x2b   : > { %p1586_p7 = pnand %p1584_p5, %p1911_p8  ;;  %p1592_p0 = scmp.lt.s32.totalorder %s1590_s13, %s1583_s9 }
  0x2d   : > { %p1587_p9 = pneg %p1586_p7  ;;  %p1593_p11 = por %p1592_p0, %p1591_p3 }
  0x2f   : > { %p1594_p12 = pnand %p1593_p11, %p1587_p9 }
  0x31   : > { %1597 = shalt.err (!%p1594_p12)
}
  0x32   : > { %1485 = dma.hbm_to_vmem [thread:$0]  (!%p1891_p6), %s1900_s12, 128, %s1903_s14, %s1905_s15  }
  0x33   : > { %s1936_s16 = sadd.s32 4294967295, %s1792_s24   ;;  %s1304_s18 = sadd.s32 4294967294, %s1792_s24  }
  0x34   : > { %p50_p0 = scmp.ne.s32.totalorder %s1784_s22, %s1780_s21  ;;  %p2288_p3 = scmp.eq.s32.totalorder %s1936_s16, 0 }
  0x35   : > { %p168_p10 = scmp.eq.s32.totalorder %s1936_s16, 1  ;;  %p174_p13 = scmp.eq.s32.totalorder %s1304_s18, 1 }
  0x36   : > { %p1945_p1 = por %p2288_p3, %p50_p0  ;;  %p1305_p2 = scmp.ge.s32.totalorder %s1792_s24, 1 }
  0x37   : > { %p2309_p4 = scmp.ne.s32.totalorder %s1788_s23, %s1784_s22  ;;  %p1957_p7 = por %p174_p13, %p50_p0 }
  0x38   : > { %s2308_s19 = scalar_select %p1945_p1, 1, 0 }
  0x39   : > { %p1953_p5 = por %p168_p10, %p2309_p4  ;;  %p207_p9 = scmp.lt.s32.totalorder %s1792_s24, 3 }
  0x3a   : > { %s2311_s14 = scalar_select %p1957_p7, 1, 0 }
  0x3b   : > { %s2310_s12 = scalar_select %p1953_p5, 1, 0 }
  0x3c   : > { %2312 = sst [smem:[#allocation22_spill]] %s2311_s14  ;;  %p1962_p11 = pnand %p1305_p2, %p207_p9 }
  0x3d   : > { %s1795_s26 = smov [#allocation8]   ;;  %s1974_s11 = scalar_lea.hbm %s2274_s0, %s1889_s7 }
  0x3e   : > { %s2313_s20 = scalar_select %p1962_p11, 1, 0 }
  0x3f   : > { %s219_s27 = sshll.u32 %s1795_s26, 4  ;;  %p1475_p12 = pneg %p1962_p11  ;;  %s1966_s27 = int_to_ptr.vmem [resolvable:$true] %s219_s27 }
  0x40   : > { %s240_s18 = scalar_lea.vmem [#allocation2], %s1886_s30  ;;  %s1989_s28 = scalar_lea.hbm %s2276_s2, %s1889_s7 }
  0x41   : > { %p1978_p0 = pnand %p1475_p12, %p2288_p3  ;;  %s247_s29 = sshll.u32 %s240_s18, 4  ;;  %s1983_s29 = int_to_ptr.vmem [resolvable:$true] %s247_s29 }
  0x42   : > { %s1598_s9 = scalar_lea.hbm %s2277_s3, 1024 }
  0x43   : > { %p1599_p10 = scmp.ne.s32.totalorder %s2277_s3, %s1598_s9  ;;  %p1600_p13 = pneg %p1978_p0 }
  0x44   : > { %p1605_p9 = scmp.lt.u32.totalorder %s1598_s9, %s2277_s3 }
  0x45   : > { %p1601_p2 = pnand %p1600_p13, %p1599_p10 }
  0x47   : > { %p1602_p4 = pneg %p1601_p2 }
  0x49   : > { %p1607_p12 = pnand %p1605_p9, %p1602_p4 }
  0x4b   : > { %1610 = shalt.err (!%p1607_p12)
}
  0x4c   : > { %s1611_s1 = scalar_lea.vmem %s1966_s27, 1024  ;;  %p1619_p1 = scmp.lt.s32.totalorder %s1966_s27, %s1966_s27 }
  0x4d   : > { %p1612_p3 = scmp.ne.s32.totalorder %s1966_s27, %s1611_s1  ;;  %p1620_p11 = scmp.lt.s32.totalorder %s1611_s1, %s1611_s1 }
  0x4f   : > { %p1614_p7 = pnand %p1612_p3, %p1600_p13  ;;  %p1621_p6 = por %p1620_p11, %p1619_p1 }
  0x51   : > { %p1615_p5 = pneg %p1614_p7 }
  0x53   : > { %p1622_p8 = pnand %p1621_p6, %p1615_p5 }
  0x55   : > { %1625 = shalt.err (!%p1622_p8)
}
  0x56   : > { %s1796_s24 = smov 64   ;;  %s1797_s21 = smov 4  }
  0x57   : > { %1478 = dma.hbm_to_vmem [thread:$0]  (!%p1978_p0), %s2277_s3, 1024, %s1966_s27, [#allocation9], %s1796_s24, %s1796_s24, %s1797_s21  }
  0x58   : > { %s2315_s14 = sand.u32 1, %s1788_s23   ;;  %s1626_s9 = scalar_lea.hbm %s1974_s11, 128 }
  0x59   : > { %s237_s26 = scalar_lea.sflag [#allocation3], %s2315_s14  ;;  %p1627_p6 = scmp.ne.s32.totalorder %s1974_s11, %s1626_s9 }
  0x5a   : > { %p2316_p8 = scmp.ne.s32.totalorder %s2307_s17, 0  ;;  %s1631_s1 = scalar_lea.hbm %s2274_s0, 256 }
  0x5b   : > { %p1632_p5 = scmp.lt.u32.totalorder %s1974_s11, %s2274_s0  ;;  %p1633_p7 = scmp.lt.u32.totalorder %s1631_s1, %s1626_s9 }
  0x5c   : > { %p1629_p3 = pnand %p1627_p6, %p2316_p8  ;;  %p1635_p10 = scmp.lt.u32.totalorder %s1626_s9, %s1974_s11 }
  0x5d   : > { %p1634_p11 = por %p1633_p7, %p1632_p5 }
  0x5e   : > { %p1630_p1 = pneg %p1629_p3 }
  0x5f   : > { %p1636_p13 = por %p1635_p10, %p1634_p11 }
  0x61   : > { %p1637_p0 = pnand %p1636_p13, %p1630_p1 }
  0x63   : > { %1640 = shalt.err (!%p1637_p0)
}
  0x64   : > { %s1641_s27 = scalar_lea.vmem %s1983_s29, 128  ;;  %s1798_s13 = smov [#allocation2]  }
  0x65   : > { %p1642_p2 = scmp.ne.s32.totalorder %s1983_s29, %s1641_s27  ;;  %s1646_s24 = sshll.u32 %s1798_s13, 4  ;;  %s1647_s24 = int_to_ptr.vmem [resolvable:$false] %s1646_s24 }
  0x66   : > { %s1648_s5 = scalar_lea.vmem %s1647_s24, 256  ;;  %p1649_p12 = scmp.lt.s32.totalorder %s1983_s29, %s1647_s24 }
  0x67   : > { %p1644_p4 = pnand %p1642_p2, %p2316_p8  ;;  %p1650_p6 = scmp.lt.s32.totalorder %s1648_s5, %s1641_s27 }
  0x69   : > { %p1645_p9 = pneg %p1644_p4  ;;  %p1651_p3 = por %p1650_p6, %p1649_p12 }
  0x6b   : > { %p1652_p5 = pnand %p1651_p3, %p1645_p9 }
  0x6d   : > { %1655 = shalt.err (!%p1652_p5)
}
  0x6e   : > { %p2317_p1 = scmp.ne.s32.totalorder %s2305_s8, 0  ;;  %s276_s6 = scalar_lea.vmem [#allocation7], %s1886_s30 }
  0x6f   : > { %s283_s21 = sshll.u32 %s276_s6, 4  ;;  %s1656_s25 = scalar_lea.hbm %s1989_s28, 128  ;;  %s284_s21 = int_to_ptr.vmem [resolvable:$true] %s283_s21 }
  0x70   : > { %1482 = dma.hbm_to_vmem [thread:$0]  (!%p2317_p1), %s1974_s11, 128, %s1983_s29, %s237_s26  }
  0x71   : > { %p1657_p7 = scmp.ne.s32.totalorder %s1989_s28, %s1656_s25  ;;  %s1661_s9 = scalar_lea.hbm %s2276_s2, 256 }
  0x72   : > { %p1662_p13 = scmp.lt.u32.totalorder %s1989_s28, %s2276_s2  ;;  %p1663_p0 = scmp.lt.u32.totalorder %s1661_s9, %s1656_s25 }
  0x73   : > { %p1659_p11 = pnand %p1657_p7, %p2316_p8  ;;  %p1665_p4 = scmp.lt.u32.totalorder %s1656_s25, %s1989_s28 }
  0x74   : > { %p1664_p2 = por %p1663_p0, %p1662_p13 }
  0x75   : > { %p1660_p10 = pneg %p1659_p11 }
  0x76   : > { %p1666_p9 = por %p1665_p4, %p1664_p2 }
  0x78   : > { %p1667_p12 = pnand %p1666_p9, %p1660_p10 }
  0x7a   : > { %1670 = shalt.err (!%p1667_p12)
}
  0x7b   : > { %s1671_s29 = scalar_lea.vmem %s284_s21, 128  ;;  %s1799_s30 = smov [#allocation7]  }
  0x7c   : > { %p1672_p6 = scmp.ne.s32.totalorder %s284_s21, %s1671_s29  ;;  %s1676_s11 = sshll.u32 %s1799_s30, 4  ;;  %s1677_s11 = int_to_ptr.vmem [resolvable:$false] %s1676_s11 }
  0x7d   : > { %s1678_s26 = scalar_lea.vmem %s1677_s11, 256  ;;  %p1679_p7 = scmp.lt.s32.totalorder %s284_s21, %s1677_s11 }
  0x7e   : > { %p1674_p3 = pnand %p1672_p6, %p2316_p8  ;;  %p1680_p11 = scmp.lt.s32.totalorder %s1678_s26, %s1671_s29 }
  0x80   : > { %p1675_p5 = pneg %p1674_p3  ;;  %p1681_p1 = por %p1680_p11, %p1679_p7 }
  0x82   : > { %p1682_p0 = pnand %p1681_p1, %p1675_p5 }
  0x84   : > { %1685 = shalt.err (!%p1682_p0)
}
  0x85   : > { %p2318_p13 = scmp.ne.s32.totalorder %s2305_s8, 0  ;;  %p2319_p10 = scmp.ne.s32.totalorder %s2313_s20, 0 }
  0x86   : > { %s2057_s17 = sand.u32 (!%p2319_p10), 1, %s1784_s22   ;;  %p2320_p8 = scmp.ne.s32.totalorder (!%p2319_p10), %s2308_s19, 0 }
  0x87   : > { %1488 = dma.hbm_to_vmem [thread:$0]  (!%p2318_p13), %s1989_s28, 128, %s284_s21, %s1905_s15  }
  0x88   : > { %292 = sbr.rel (%p2319_p10) target bundleno = 1593 (0x639), region = 40  ;;  %s2060_s1 = sshll.u32 (!%p2319_p10), %s2057_s17, 3 }
  0x89   : > { %s295_s27 = scalar_lea.sflag (!%p2319_p10), [#allocation3], %s2057_s17  ;;  %s298_s13 = scalar_lea.vmem (!%p2319_p10), [#allocation2], %s2060_s1 }
  0x8f   : > { %1759 = dma.done.wait (%p2320_p8), %s295_s27, 128  }
  0x90   : > { %1761 = vsyncadd (%p2320_p8), %s295_s27, 4294967168  ;;  %s303_s28 = sand.u32 1, %s1936_s16   ;;  %s307_s15 = scalar_lea.vmem [#allocation5], %s2060_s1 }
  0x91   : > { %s304_s8 = scalar_lea.sflag [#allocation6], %s303_s28 }
  0x92   : > { %1763 = dma.done.wait (%p2320_p8), %s304_s8, 256  }
  0x93   : > { %1765 = vsyncadd (%p2320_p8), %s304_s8, 4294967040  ;;  %s316_s20 = scalar_lea.vmem [#allocation7], %s2060_s1  ;;  %p2321_p1 = scmp.eq.s32.totalorder %s1936_s16, 0 }
  0x95   : > { %1767 = dma.done.wait (%p2321_p1), [#allocation9], 1024   ;;  %p2322_p2 = pmov %p2321_p1 }
  0x96   : > { %v1800_v0 = vmov 0.0   ;;  %vm1801_vm0 = vmmov 0   ;;  %v1544_v1 = vld [vmem:[#allocation8] sm:$0xff]   ;;  %v1545_v2 = vld [vmem:[#allocation8 + $0x10] sm:$0xff]   ;;  %v1546_v3 = vld [vmem:[#allocation8 + $0x8] sm:$0xff]   ;;  %vm392_vm1 = vcmask 261120  }
  0x97   : > { %1769 = vsyncadd (%p2322_p2), [#allocation9], 4294966272  ;;  %1381 = vmatprep.subr.bf16.mxu0 %v1800_v0  ;;  %1389 = vmatprep.subr.bf16.mxu1 %v1800_v0  ;;  %v1547_v4 = vld [vmem:[#allocation8 + $0x18] sm:$0xff]   ;;  %v367_v6 = vld [vmem:[%s307_s15] sm:$0xff]  ;;  %s1802_s21 = smov 120   ;;  %vm608_vm2 = vcmask 64512  }
  0x98   : > { %1385 = vmatprep.mubr.msk.bf16.mxu0 %vm1801_vm0, %v1800_v0  ;;  %1393 = vmatprep.mubr.msk.bf16.mxu1 %vm1801_vm0, %v1800_v0  ;;  %v365_v5 = vld [vmem:[%s298_s13] sm:$0xff]  ;;  %v368_v8 = vpack.c.bf16 %v367_v6, %v367_v6  ;;  %v1548_v9 = vld [vmem:[#allocation8 + $0x20] sm:$0xff]   ;;  %v1549_v10 = vld [vmem:[#allocation8 + $0x28] sm:$0xff]   ;;  %s1803_s25 = smov 104   ;;  %s1804_s7 = smov 112   ;;  %vm848_vm3 = vcmask 1043456  }
  0x99   : > { %1382 = vmatpush3.bf16.msra.mxu0 %v1544_v1  ;;  %1390 = vmatpush3.bf16.msra.mxu1 %v1545_v2  ;;  %v366_v7 = vpack.c.bf16 %v365_v5, %v365_v5  ;;  %v369_v11 = vld [vmem:[%s316_s20] sm:$0xff]  ;;  %s1320_s10 = sshll.u32 %s2057_s17, 5  ;;  %s1805_s29 = smov 8   ;;  %vm1043_vm4 = vcmask 130048   ;;  %vm1045_vm5 = vcmask 195584  }
  0x9a   : > { %1383 = vmatprep.subr.bf16.mxu0 %v1800_v0  ;;  %1391 = vmatprep.subr.bf16.mxu1 %v1800_v0  ;;  %v370_v12 = vpack.c.bf16 %v369_v11, %v369_v11  ;;  %v1321_v13 = vld [vmem:[%s2278_s4] ss:$0 sm:$0xff]  ;;  %v1325_v14 = vld [vmem:[%s2278_s4 + $0x1] ss:$0 sm:$0xff]  ;;  %v1329_v43 = vld [vmem:[%s2278_s4 + $0x2] ss:$0 sm:$0xff] }
  0x9b   : > { %s2160_s18 = scalar_lea.vmem [#allocation11], %s1320_s10  ;;  %s1806_s30 = smov 16  }
  0x9c   : > { %s1807_s11 = smov 24   ;;  %s1352_s26 = sshll.u32 %s1936_s16, 9 }
  0x9d   : > { %1384 = vmatpush3.bf16.msra.mxu0 %v1546_v3  ;;  %1392 = vmatpush3.bf16.msra.mxu1 %v1547_v4  ;;  %s1146_s27 = sshll.u32 %s2160_s18, 4  ;;  %s2323_s8 = sld [smem:[#allocation25_spill]]  ;;  %s2194_s27 = int_to_ptr.vmem [resolvable:$true] %s1146_s27 }
  0x9e   : > { %1397 = vmatprep.subr.bf16.mxu0 %v1800_v0  ;;  %1405 = vmatprep.subr.bf16.mxu1 %v1800_v0  ;;  %s1120_s20 = scalar_lea.sflag [#allocation12], %s2057_s17  ;;  %s1686_s19 = scalar_lea.vmem %s2194_s27, 512 }
  0x9f   : > { %p1687_p4 = scmp.ne.s32.totalorder %s2194_s27, %s1686_s19  ;;  %p2324_p9 = scmp.ne.s32.totalorder %s2310_s12, 0 }
  0xa0   : > { %1386 = vmatmul.mubr.msk.bf16.vlgmr.msra.gmra.mrb[0].mxu0 %vm392_vm1, %v366_v7  ;;  %1394 = vmatmul.mubr.msk.bf16.vlgmr.msra.gmra.mrb[0].mxu1 %vm392_vm1, %v368_v8  ;;  %s1808_s24 = smov [#allocation11]  }
  0xa1   : > { %1401 = vmatprep.mubr.msk.bf16.mxu0 %vm1801_vm0, %v1800_v0  ;;  %1407 = vmatprep.mubr.msk.bf16.mxu1 %vm1801_vm0, %v1800_v0  ;;  %p1688_p12 = pnand %p1687_p4, %p2324_p9  ;;  %s1690_s5 = sshll.u32 %s1808_s24, 4  ;;  %s1691_s5 = int_to_ptr.vmem [resolvable:$false] %s1690_s5 }
  0xa2   : > { %1398 = vmatpush3.bf16.msra.mxu0 %v1548_v9  ;;  %s1692_s6 = scalar_lea.vmem %s1691_s5, 1024  ;;  %p1693_p3 = scmp.lt.s32.totalorder %s2194_s27, %s1691_s5 }
  0xa3   : > { %1399 = vmatprep.subr.bf16.mxu0 %v1800_v0  ;;  %s2192_s15 = scalar_lea.hbm %s2323_s8, %s1352_s26  ;;  %p1689_p6 = pneg %p1688_p12 }
  0xa4   : > { %p1694_p5 = scmp.lt.s32.totalorder %s1692_s6, %s1686_s19 }
  0xa6   : > { %1400 = vmatpush3.bf16.msra.mxu0 %v1549_v10  ;;  %p1695_p7 = por %p1694_p5, %p1693_p3 }
  0xa7   : > { %1411 = vmatprep.subr.bf16.mxu0 %v1800_v0 }
  0xa8   : > { %p1696_p11 = pnand %p1695_p7, %p1689_p6 }
  0xa9   : > { %1402 = vmatmul.mubr.msk.bf16.vlgmr.msra.gmra.mrb[4].mxu0 %vm392_vm1, %v370_v12 }
  0xaa   : > { %1413 = vmatprep.mubr.msk.bf16.mxu0 %vm1801_vm0, %v1800_v0 }
 0x173   : > { %v430_v15 = vpop.f32.mrb[0].mxu0  ;;  %v495_v17 = vpop.f32.mrb[0].mxu1 }
 0x174   : > { %v431_v16 = vadd.f32 %v1321_v13, %v430_v15  ;;  %v1387_v18 = vpop.f32.mrb[1].mxu0  ;;  %v496_v19 = vadd.f32 %v1325_v14, %v495_v17  ;;  %v1395_v20 = vpop.f32.mrb[1].mxu1 }
 0x175   : > { %v433_v21 = vpop.f32.mrb[2].mxu0  ;;  %v498_v22 = vpop.f32.mrb[2].mxu1 }
 0x176   : > { %567 = vrot.lane.b32.xlu1 %v431_v16, %s1802_s21  ;;  %v1388_v23 = vpop.f32.mrb[3].mxu0  ;;  %581 = vrot.lane.b32.xlu0 %v496_v19, %s1802_s21  ;;  %v1396_v24 = vpop.f32.mrb[3].mxu1  ;;  %v590_v25 = vpack.c.bf16 %v496_v19, %v496_v19  ;;  %v576_v27 = vpack.c.bf16 %v431_v16, %v431_v16 }
 0x178   : > { %v613_v26 = vsel %vm608_vm2, %v590_v25, 0 }
 0x179   : > { %1406 = vmatpush3.bf16.xpose.msra.mxu1 %v613_v26 }
 0x17a   : > { %587 = vrot.lane.b32.xlu1 %v496_v19, %s1803_s25  ;;  %584 = vrot.lane.b32.xlu0 %v496_v19, %s1804_s7 }
 0x17b   : > { %1417 = vmatprep.subr.bf16.mxu1 %v1800_v0 }
 0x17c   : > { %v560_v44 = vpop.f32.mrb[4].mxu0 }
 0x17d   : > { %v2137_v45 = vadd.f32 %v1329_v43, %v560_v44  ;;  %v1403_v46 = vpop.f32.mrb[5].mxu0 }
 0x17e   : > { %573 = vrot.lane.b32.xlu1 %v431_v16, %s1803_s25  ;;  %570 = vrot.lane.b32.xlu0 %v431_v16, %s1804_s7  ;;  %v563_v47 = vpop.f32.mrb[6].mxu0 }
 0x17f   : > { %v1404_v48 = vpop.f32.mrb[7].mxu0  ;;  %v604_v49 = vpack.c.bf16 %v2137_v45, %v2137_v45 }
 0x180   : > { %1408 = vmatmul.mubr.msk.bf16.vlgmr.msra.gmra.mrb[4].mxu1 %vm608_vm2, %v576_v27 }
 0x181   : > { %1419 = vmatprep.mubr.msk.bf16.mxu1 %vm1801_vm0, %v1800_v0  ;;  %v850_v50 = vsel %vm848_vm3, %v604_v49, 0 }
 0x1e8   : > { %v568_v28 = vpop.permute.xlu1 %567  ;;  %v582_v29 = vpop.permute.xlu0 %581 }
 0x1e9   : > { %v591_v30 = vpack.c.bf16 %v582_v29, %v582_v29  ;;  %v577_v37 = vpack.c.bf16 %v568_v28, %v568_v28 }
 0x1eb   : > { %v659_v31 = vsel %vm608_vm2, %v591_v30, 0 }
 0x1ec   : > { %v585_v32 = vpop.permute.xlu0 %584  ;;  %1412 = vmatpush3.bf16.xpose.msra.mxu0 %v659_v31  ;;  %v588_v33 = vpop.permute.xlu1 %587 }
 0x1ed   : > { %v592_v34 = vpack.c.bf16 %v585_v32, %v585_v32  ;;  %1423 = vmatprep.subr.bf16.mxu0 %v1800_v0  ;;  %v593_v36 = vpack.c.bf16 %v588_v33, %v588_v33 }
 0x1ef   : > { %v705_v35 = vsel %vm608_vm2, %v592_v34, 0  ;;  %v751_v39 = vsel %vm608_vm2, %v593_v36, 0 }
 0x1f0   : > { %1418 = vmatpush3.bf16.xpose.msra.mxu1 %v705_v35  ;;  %v571_v38 = vpop.permute.xlu0 %570  ;;  %v574_v41 = vpop.permute.xlu1 %573 }
 0x1f1   : > { %1429 = vmatprep.subr.bf16.mxu1 %v1800_v0  ;;  %v578_v40 = vpack.c.bf16 %v571_v38, %v571_v38  ;;  %v579_v42 = vpack.c.bf16 %v574_v41, %v574_v41 }
 0x1f3   : > { %1414 = vmatmul.mubr.msk.bf16.vlgmr.msra.gmra.mrb[8].mxu0 %vm608_vm2, %v577_v37 }
 0x1f4   : > { %1424 = vmatpush3.bf16.xpose.msra.mxu0 %v751_v39  ;;  %1425 = vmatprep.mubr.msk.bf16.mxu0 %vm1801_vm0, %v1800_v0 }
 0x1f5   : > { %1435 = vmatprep.subr.bf16.mxu0 %v1800_v0 }
 0x1f7   : > { %1420 = vmatmul.mubr.msk.bf16.vlgmr.msra.gmra.mrb[8].mxu1 %vm608_vm2, %v578_v40 }
 0x1f8   : > { %1431 = vmatprep.mubr.msk.bf16.mxu1 %vm1801_vm0, %v1800_v0  ;;  %1430 = vmatpush3.bf16.msra.mxu1 %v850_v50 }
 0x1f9   : > { %1441 = vmatprep.subr.bf16.mxu1 %v1800_v0 }
 0x1fb   : > { %1426 = vmatmul.mubr.msk.bf16.vlgmr.msra.gmra.mrb[12].mxu0 %vm608_vm2, %v579_v42 }
 0x1fc   : > { %1437 = vmatprep.mubr.msk.bf16.mxu0 %vm1801_vm0, %v1800_v0 }
 0x253   : > { %v649_v51 = vpop.f32.mrb[4].mxu1 }
 0x254   : > { %v1409_v52 = vpop.f32.mrb[5].mxu1  ;;  %v793_v53 = vsel %vm608_vm2, %v649_v51, -inf }
 0x255   : > { %794 = vmax.xlane.f32.xlu0 %v793_v53  ;;  %v652_v54 = vpop.f32.mrb[6].mxu1 }
 0x256   : > { %v1410_v55 = vpop.f32.mrb[7].mxu1 }
 0x2c6   : > { %v695_v56 = vpop.f32.mrb[8].mxu0 }
 0x2c7   : > { %v1415_v57 = vpop.f32.mrb[9].mxu0  ;;  %v796_v58 = vsel %vm608_vm2, %v695_v56, -inf }
 0x2c8   : > { %797 = vmax.xlane.f32.xlu1 %v796_v58  ;;  %v698_v59 = vpop.f32.mrb[10].mxu0  ;;  %v1550_v57 = vld [vmem:[#allocation8 + $0x30] sm:$0xff]   ;;  %v1551_v58 = vld [vmem:[#allocation8 + $0x38] sm:$0xff]  }
 0x2c9   : > { %v1416_v60 = vpop.f32.mrb[11].mxu0 }
 0x2ca   : > { %v741_v61 = vpop.f32.mrb[8].mxu1 }
 0x2cb   : > { %v1421_v62 = vpop.f32.mrb[9].mxu1  ;;  %v799_v63 = vsel %vm608_vm2, %v741_v61, -inf }
 0x2cc   : > { %800 = vmax.xlane.f32.xlu0 %v799_v63  ;;  %v744_v1 = vpop.f32.mrb[10].mxu1 }
 0x2cd   : > { %v1422_v2 = vpop.f32.mrb[11].mxu1 }
 0x2ce   : > { %v787_v3 = vpop.f32.mrb[12].mxu0 }
 0x2cf   : > { %v1427_v4 = vpop.f32.mrb[13].mxu0  ;;  %v802_v5 = vsel %vm608_vm2, %v787_v3, -inf }
 0x2d0   : > { %803 = vmax.xlane.f32.xlu0 %v802_v5  ;;  %v790_v6 = vpop.f32.mrb[14].mxu0 }
 0x2d1   : > { %v1428_v7 = vpop.f32.mrb[15].mxu0 }
 0x2d9   : > { %595 = vrot.lane.b32.xlu1 %v2137_v45, %s1802_s21 }
 0x2e2   : > { %v795_v8 = vpop.xlane.xlu0 %794 }
 0x2e3   : > { %v805_v9 = vsub.f32 %v649_v51, %v795_v8 }
 0x2e5   : > { %v809_v10 = vmul.f32 1.442695, %v805_v9 }
 0x2e7   : > { %1552 = vpow2.f32 %v809_v10 }
 0x2f1   : > { %v1553_v11 = vpop.eup %1552 }
 0x2f2   : > { %v817_v12 = vsel %vm608_vm2, %v1553_v11, 0.0 }
 0x2fd   : > { %818 = vadd.xlane.f32.xlu1 %v817_v12 }
 0x355   : > { %v798_v13 = vpop.xlane.xlu1 %797 }
 0x356   : > { %v806_v14 = vsub.f32 %v695_v56, %v798_v13 }
 0x358   : > { %v811_v15 = vmul.f32 1.442695, %v806_v14 }
 0x359   : > { %v801_v16 = vpop.xlane.xlu0 %800  ;;  %v596_v17 = vpop.permute.xlu1 %595 }
 0x35a   : > { %1554 = vpow2.f32 %v811_v15  ;;  %v807_v18 = vsub.f32 %v741_v61, %v801_v16  ;;  %v605_v19 = vpack.c.bf16 %v596_v17, %v596_v17 }
 0x35c   : > { %v813_v20 = vmul.f32 1.442695, %v807_v18  ;;  %v896_v21 = vsel %vm848_vm3, %v605_v19, 0 }
 0x35d   : > { %1436 = vmatpush3.bf16.msra.mxu0 %v896_v21  ;;  %v804_v22 = vpop.xlane.xlu0 %803 }
 0x35e   : > { %1556 = vpow2.f32 %v813_v20  ;;  %v808_v23 = vsub.f32 %v787_v3, %v804_v22  ;;  %1447 = vmatprep.subr.bf16.mxu0 %v1800_v0 }
 0x360   : > { %v815_v24 = vmul.f32 1.442695, %v808_v23 }
 0x362   : > { %1558 = vpow2.f32 %v815_v24 }
 0x364   : > { %v1555_v25 = vpop.eup %1554 }
 0x365   : > { %v820_v26 = vsel %vm608_vm2, %v1555_v25, 0.0 }
 0x366   : > { %821 = vadd.xlane.f32.xlu0 %v820_v26 }
 0x368   : > { %v1557_v27 = vpop.eup %1556 }
 0x369   : > { %v823_v28 = vsel %vm608_vm2, %v1557_v27, 0.0 }
 0x36a   : > { %824 = vadd.xlane.f32.xlu1 %v823_v28 }
 0x36c   : > { %v1559_v29 = vpop.eup %1558 }
 0x36d   : > { %v826_v30 = vsel %vm608_vm2, %v1559_v29, 0.0 }
 0x36e   : > { %827 = vadd.xlane.f32.xlu0 %v826_v30 }
 0x37b   : > { %601 = vrot.lane.b32.xlu1 %v2137_v45, %s1803_s25 }
 0x384   : > { %598 = vrot.lane.b32.xlu0 %v2137_v45, %s1804_s7 }
 0x38a   : > { %v819_v31 = vpop.xlane.xlu1 %818 }
 0x38b   : > { %1560 = vrcp.f32 %v819_v31 }
 0x395   : > { %v1561_v32 = vpop.eup %1560 }
 0x396   : > { %v830_v33 = vmul.f32 %v1561_v32, %v1553_v11 }
 0x398   : > { %837 = vst.msk [vmem:[%s2160_s18] sm:$0xff] %vm608_vm2, %v830_v33  ;;  %v841_v34 = vpack.c.bf16 %v830_v33, %v830_v33 }
 0x39a   : > { %1432 = vmatmul.mubr.msk.bf16.vlgmr.msra.gmra.mrb[12].mxu1 %vm608_vm2, %v841_v34 }
 0x39b   : > { %1443 = vmatprep.mubr.msk.bf16.mxu1 %vm1801_vm0, %v1800_v0 }
 0x3f3   : > { %v822_v35 = vpop.xlane.xlu0 %821 }
 0x3f4   : > { %1562 = vrcp.f32 %v822_v35 }
 0x3f7   : > { %v825_v36 = vpop.xlane.xlu1 %824 }
 0x3f8   : > { %1564 = vrcp.f32 %v825_v36 }
 0x3fb   : > { %v828_v37 = vpop.xlane.xlu0 %827  ;;  %v602_v38 = vpop.permute.xlu1 %601 }
 0x3fc   : > { %1566 = vrcp.f32 %v828_v37  ;;  %v607_v41 = vpack.c.bf16 %v602_v38, %v602_v38 }
 0x3fe   : > { %v1563_v39 = vpop.eup %1562  ;;  %v988_v48 = vsel %vm848_vm3, %v607_v41, 0 }
 0x3ff   : > { %v832_v40 = vmul.f32 %v1563_v39, %v1555_v25  ;;  %v599_v42 = vpop.permute.xlu0 %598 }
 0x400   : > { %v606_v43 = vpack.c.bf16 %v599_v42, %v599_v42 }
 0x401   : > { %838 = vst.msk [vmem:[%s2160_s18 + $0x8] sm:$0xff] %vm608_vm2, %v832_v40  ;;  %v842_v44 = vpack.c.bf16 %v832_v40, %v832_v40 }
 0x402   : > { %v1565_v45 = vpop.eup %1564  ;;  %v942_v46 = vsel %vm848_vm3, %v606_v43, 0 }
 0x403   : > { %v834_v47 = vmul.f32 %v1565_v45, %v1557_v27  ;;  %1438 = vmatmul.mubr.msk.bf16.vlgmr.msra.gmra.mrb[16].mxu0 %vm608_vm2, %v842_v44  ;;  %1442 = vmatpush3.bf16.msra.mxu1 %v942_v46 }
 0x404   : > { %1448 = vmatpush3.bf16.msra.mxu0 %v988_v48  ;;  %1449 = vmatprep.mubr.msk.bf16.mxu0 %vm1801_vm0, %v1800_v0 }
 0x405   : > { %839 = vst.msk [vmem:[%s2160_s18 + $0x10] sm:$0xff] %vm608_vm2, %v834_v47  ;;  %v843_v49 = vpack.c.bf16 %v834_v47, %v834_v47  ;;  %1453 = vmatprep.subr.bf16.mxu1 %v1800_v0 }
 0x406   : > { %v1567_v50 = vpop.eup %1566 }
 0x407   : > { %v836_v51 = vmul.f32 %v1567_v50, %v1559_v29  ;;  %1444 = vmatmul.mubr.msk.bf16.vlgmr.msra.gmra.mrb[16].mxu1 %vm608_vm2, %v843_v49 }
 0x408   : > { %1457 = vmatprep.mubr.msk.bf16.mxu1 %vm1801_vm0, %v1800_v0  ;;  %1454 = vmatpush3.bf16.msra.mxu1 %v1550_v57 }
 0x409   : > { %840 = vst.msk [vmem:[%s2160_s18 + $0x18] sm:$0xff] %vm608_vm2, %v836_v51  ;;  %v844_v52 = vpack.c.bf16 %v836_v51, %v836_v51  ;;  %1455 = vmatprep.subr.bf16.mxu1 %v1800_v0 }
 0x40b   : > { %1450 = vmatmul.mubr.msk.bf16.vlgmr.msra.gmra.mrb[20].mxu0 %vm608_vm2, %v844_v52 }
 0x40c   : > { %1456 = vmatpush3.bf16.msra.mxu1 %v1551_v58 }
 0x46d   : > { %v886_v53 = vpop.f32.mrb[12].mxu1 }
 0x46e   : > { %v1433_v54 = vpop.f32.mrb[13].mxu1 }
 0x46f   : > { %v889_v55 = vpop.f32.mrb[14].mxu1 }
 0x470   : > { %v1434_v56 = vpop.f32.mrb[15].mxu1 }
 0x4d6   : > { %v932_v59 = vpop.f32.mrb[16].mxu0 }
 0x4d7   : > { %1031 = vrot.lane.b32.xlu1 %v932_v59, %s1805_s29  ;;  %v1439_v60 = vpop.f32.mrb[17].mxu0 }
 0x4d8   : > { %v935_v61 = vpop.f32.mrb[18].mxu0 }
 0x4d9   : > { %v1440_v62 = vpop.f32.mrb[19].mxu0 }
 0x4da   : > { %v978_v63 = vpop.f32.mrb[16].mxu1 }
 0x4db   : > { %1035 = vrot.lane.b32.xlu0 %v978_v63, %s1806_s30  ;;  %v1445_v1 = vpop.f32.mrb[17].mxu1 }
 0x4dc   : > { %v981_v2 = vpop.f32.mrb[18].mxu1 }
 0x4dd   : > { %v1446_v3 = vpop.f32.mrb[19].mxu1 }
 0x4de   : > { %v1024_v4 = vpop.f32.mrb[20].mxu0 }
 0x4df   : > { %1039 = vrot.lane.b32.xlu1 %v1024_v4, %s1807_s11  ;;  %v1451_v0 = vpop.f32.mrb[21].mxu0 }
 0x4e0   : > { %v1027_v5 = vpop.f32.mrb[22].mxu0 }
 0x4e1   : > { %v1452_v6 = vpop.f32.mrb[23].mxu0 }
 0x549   : > { %v1032_v7 = vpop.permute.xlu1 %1031 }
 0x54a   : > { %v1042_v9 = vsel %vm608_vm2, %v886_v53, %v1032_v7 }
 0x54d   : > { %v1036_v8 = vpop.permute.xlu0 %1035 }
 0x54e   : > { %v1044_v10 = vsel %vm1043_vm4, %v1042_v9, %v1036_v8 }
 0x551   : > { %v1040_v11 = vpop.permute.xlu1 %1039 }
 0x552   : > { %v1046_v12 = vsel %vm1045_vm5, %v1044_v10, %v1040_v11 }
 0x553   : > { %v1047_v13 = vpack.c.bf16 %v1046_v12, %v1046_v12 }
 0x555   : > { %1458 = vmatmul.mubr.msk.bf16.vlgmr.msra.gmra.mrb[20].mxu1 %vm392_vm1, %v1047_v13 }
 0x556   : > { %1699 = shalt.err (!%p1696_p11)
}
 0x557   : > { %s1700_s21 = scalar_lea.hbm %s2192_s15, 512  ;;  %s1704_s14 = scalar_lea.hbm %s2323_s8, 1024 }
 0x558   : > { %p1701_p0 = scmp.ne.s32.totalorder %s2192_s15, %s1700_s21  ;;  %p1705_p8 = scmp.lt.u32.totalorder %s2192_s15, %s2323_s8 }
 0x559   : > { %p1706_p1 = scmp.lt.u32.totalorder %s1704_s14, %s1700_s21  ;;  %p1708_p4 = scmp.lt.u32.totalorder %s1700_s21, %s2192_s15 }
 0x55a   : > { %p1702_p13 = pnand %p1701_p0, %p2324_p9 }
 0x55b   : > { %p1707_p2 = por %p1706_p1, %p1705_p8 }
 0x55c   : > { %p1703_p10 = pneg %p1702_p13 }
 0x55d   : > { %p1709_p12 = por %p1708_p4, %p1707_p2 }
 0x55f   : > { %p1710_p6 = pnand %p1709_p12, %p1703_p10 }
 0x561   : > { %1713 = shalt.err (!%p1710_p6)
}
 0x562   : > { %s1809_s18 = smov 128   ;;  %v1341_v14 = vld [vmem:[%s2278_s4 + $0x3] ss:$0 sm:$0xff]  ;;  %s1347_s26 = sshll.u32 %s1936_s16, 7 }
 0x563   : > { %1472 = dma.vmem_to_hbm [thread:$0]  (%p2324_p9), %s2194_s27, 512, %s2192_s15, %s1120_s20, %s1809_s18, %s1809_s18, %s1805_s29  }
 0x564   : > { %s356_s13 = scalar_lea.vmem [#allocation10], %s2060_s1  ;;  %s2325_s5 = sld [smem:[#allocation24_spill]] }
 0x565   : > { %s1133_s28 = sshll.u32 %s356_s13, 4  ;;  %s1115_s16 = scalar_lea.sflag [#allocation4], %s2057_s17  ;;  %s2231_s28 = int_to_ptr.vmem [resolvable:$true] %s1133_s28 }
 0x566   : > { %s1714_s1 = scalar_lea.vmem %s2231_s28, 128  ;;  %s1810_s29 = smov [#allocation10]  }
 0x567   : > { %p1715_p3 = scmp.ne.s32.totalorder %s2231_s28, %s1714_s1  ;;  %s1718_s27 = sshll.u32 %s1810_s29, 4  ;;  %s1719_s27 = int_to_ptr.vmem [resolvable:$false] %s1718_s27 }
 0x568   : > { %s1720_s15 = scalar_lea.vmem %s1719_s27, 256  ;;  %p1721_p11 = scmp.lt.s32.totalorder %s2231_s28, %s1719_s27 }
 0x569   : > { %p1716_p5 = pnand %p1715_p3, %p2324_p9  ;;  %p1722_p0 = scmp.lt.s32.totalorder %s1720_s15, %s1714_s1 }
 0x56a   : > { %s2229_s6 = scalar_lea.hbm %s2325_s5, %s1347_s26 }
 0x56b   : > { %p1717_p7 = pneg %p1716_p5  ;;  %p1723_p13 = por %p1722_p0, %p1721_p11 }
 0x56d   : > { %p1724_p10 = pnand %p1723_p13, %p1717_p7 }
 0x628   : > { %v1107_v15 = vpop.f32.mrb[20].mxu1 }
 0x629   : > { %v1108_v16 = vadd.f32 %v1341_v14, %v1107_v15  ;;  %v1459_v17 = vpop.f32.mrb[21].mxu1 }
 0x62a   : > { %v1110_v18 = vpop.f32.mrb[22].mxu1 }
 0x62b   : > { %v1460_v19 = vpop.f32.mrb[23].mxu1  ;;  %1113 = vst.msk [vmem:[%s356_s13] sm:$0xff] %vm392_vm1, %v1108_v16 }
 0x62c   : > { %1727 = shalt.err (!%p1724_p10)
}
 0x62d   : > { %s1728_s17 = scalar_lea.hbm %s2229_s6, 128  ;;  %s1732_s25 = scalar_lea.hbm %s2325_s5, 256 }
 0x62e   : > { %p1729_p8 = scmp.ne.s32.totalorder %s2229_s6, %s1728_s17  ;;  %p1733_p4 = scmp.lt.u32.totalorder %s2229_s6, %s2325_s5 }
 0x62f   : > { %p1734_p12 = scmp.lt.u32.totalorder %s1732_s25, %s1728_s17  ;;  %p1736_p3 = scmp.lt.u32.totalorder %s1728_s17, %s2229_s6 }
 0x630   : > { %p1730_p1 = pnand %p1729_p8, %p2324_p9 }
 0x631   : > { %p1735_p6 = por %p1734_p12, %p1733_p4 }
 0x632   : > { %p1731_p2 = pneg %p1730_p1 }
 0x633   : > { %p1737_p5 = por %p1736_p3, %p1735_p6 }
 0x635   : > { %p1738_p7 = pnand %p1737_p5, %p1731_p2 }
 0x637   : > { %1741 = shalt.err (!%p1738_p7)
}
 0x638   : > { %1471 = dma.vmem_to_hbm [thread:$0]  (%p2324_p9), %s2231_s28, 128, %s2229_s6, %s1115_s16  }
 0x639 PF: > { %s2326_s9 = sld [smem:[#allocation18_spill]]  ;;  %s2327_s10 = sld [smem:[#allocation22_spill]] }
 0x63a   : > { %s2328_s18 = sld [smem:[#allocation19_spill]] }
 0x63f   : > { %s1161_s30 = sand.u32 1, %s2326_s9   ;;  %p2329_p11 = scmp.ne.s32.totalorder %s2327_s10, 0 }
 0x640   : > { %p2330_p0 = scmp.ge.s32.totalorder %s2328_s18, 2  ;;  %s1162_s11 = scalar_lea.sflag [#allocation4], %s1161_s30 }
 0x642   : > { %p1490_p13 = pnand %p2330_p0, %p2329_p11 }
 0x644   : > { %1771 = dma.done.wait (!%p1490_p13), %s1162_s11, 128  }
 0x645   : > { %1773 = vsyncadd (!%p1490_p13), %s1162_s11, 4294967168  ;;  %s1171_s26 = scalar_lea.sflag [#allocation12], %s1161_s30 }
 0x646   : > { %1775 = dma.done.wait (!%p1490_p13), %s1171_s26, 512  }
 0x647   : > { %1777 = vsyncadd (!%p1490_p13), %s1171_s26, 4294966784  ;;  %s2331_s24 = sld [smem:[#allocation20_spill]]  ;;  %s2332_s12 = sld [smem:[#allocation21_spill]] }
 0x648   : > { %s2333_s21 = smov %s1784_s22  ;;  %s2334_s22 = smov %s1788_s23 }
 0x64d   : > { %p27_p9 = scmp.ge.s32.totalorder %s2331_s24, 4   ;;  %s2335_s23 = smov %s2332_s12 }
 0x64f   :  { %29 = sbr.rel (!%p27_p9) target bundleno = 14 (0xe), region = 133 }
 0x656   :  { %1176 = vsyncpa [#allocation3], 1 }
 0x657   :  { %1178 = vsyncpa [#allocation3 + $0x1], 1 }
 0x658   :  { %1179 = vsyncpa [#allocation6], 1 }
 0x659   :  { %1181 = vsyncpa [#allocation6 + $0x1], 1 }
 0x65a   :  { %1182 = vsyncpa [#allocation9], 1 }
 0x65b   :  { %1183 = vsyncpa [#allocation4], 1 }
 0x65c   :  { %1185 = vsyncpa [#allocation4 + $0x1], 1 }
 0x65d   :  { %1186 = vsyncpa [#allocation12], 1 }
 0x65e   :  { %1188 = vsyncpa [#allocation12 + $0x1], 1 }

</bundles_post_ra>
